<compile_context>
chip_gen: v7x
topology: tpu7x:2x2x1
jax: 0.10.0
libtpu: 0.0.40
codegen_flags: <defaults>
</compile_context>

<pallas_src>
import functools

import jax
import jax.numpy as jnp
from jax.experimental import pallas as pl
from jax.experimental.pallas import tpu as pltpu


# ----------------------------- Pallas kernels ------------------------------

def _mm_bn_kernel(a_ref, b_ref, s_ref, c_ref, o_ref, acc_ref, *, relu):
    """Tiled matmul with fused BatchNorm(scale,bias) [+ReLU] epilogue."""
    @pl.when(pl.program_id(2) == 0)
    def _zero():
        acc_ref[...] = jnp.zeros_like(acc_ref)

    acc_ref[...] += jnp.dot(a_ref[...], b_ref[...],
                            preferred_element_type=jnp.float32)

    @pl.when(pl.program_id(2) == pl.num_programs(2) - 1)
    def _write():
        y = acc_ref[...] * s_ref[...] + c_ref[...]
        if relu:
            y = jnp.maximum(y, 0.0)
        o_ref[...] = y


def _mm_bn_res_kernel(a_ref, b_ref, s_ref, c_ref, r_ref, o_ref, acc_ref, *, relu):
    """Tiled matmul with fused BatchNorm + residual add [+ReLU] epilogue."""
    @pl.when(pl.program_id(2) == 0)
    def _zero():
        acc_ref[...] = jnp.zeros_like(acc_ref)

    acc_ref[...] += jnp.dot(a_ref[...], b_ref[...],
                            preferred_element_type=jnp.float32)

    @pl.when(pl.program_id(2) == pl.num_programs(2) - 1)
    def _write():
        y = acc_ref[...] * s_ref[...] + c_ref[...] + r_ref[...]
        if relu:
            y = jnp.maximum(y, 0.0)
        o_ref[...] = y


def _add_kernel(a_ref, b_ref, o_ref):
    o_ref[...] = a_ref[...] + b_ref[...]


def _max9_kernel(x_ref, o_ref):
    # max over the 9 shifted 3x3 windows (leading axis)
    o_ref[...] = jnp.max(x_ref[...], axis=0)


# ------------------------------ small helpers -------------------------------

def _round_up(x, m):
    return (x + m - 1) // m * m


def _flat2d(shape):
    """Pick a lane-dense 2D layout (rows, width) for an elementwise op."""
    total = 1
    for d in shape:
        total *= d
    for w in (1024, 512, 256, 128):
        if total % w == 0 and (total // w) % 8 == 0:
            return total // w, w
    return total // shape[-1], shape[-1]        # fallback: channel-last


def _row_tile(rows, cap=512):
    for t in (cap, 256, 128, 64, 32, 16, 8):
        if t <= rows and rows % t == 0:
            return t
    return rows                                  # single full-extent block


# --------------------------- fused matmul wrapper ----------------------------

def fused_matmul(a, b, scale, bias, *, relu, residual=None):
    """(M,K)@(K,N) in bf16 with f32 accumulation, fused scale/bias[/res][/relu].

    a: (M, K) activations/patches; b: (K, N) weights; scale/bias: (N,) f32;
    residual: optional (M, N) f32 added before the ReLU.  Returns (M, N) f32.
    """
    M, K = a.shape
    K2, N = b.shape
    assert K == K2

    # -- adaptive tiles; full-extent blocks avoid padding for ragged dims --
    tm = min(128, _round_up(M, 16))
    Mp = _round_up(M, tm)
    if N <= 256:
        tn, Np = N, N
    else:
        Np = _round_up(N, 128)
        tn = next(t for t in (256, 128) if Np % t == 0)
    if K <= 512:
        tk, Kp = K, K
    else:
        Kp = _round_up(K, 128)
        tk = next(t for t in (512, 384, 256, 128) if Kp % t == 0)

    a = a.astype(jnp.bfloat16)
    b = b.astype(jnp.bfloat16)
    if (Mp, Kp) != (M, K):
        a = jnp.pad(a, ((0, Mp - M), (0, Kp - K)))
    if (Kp, Np) != (K, N):
        b = jnp.pad(b, ((0, Kp - K), (0, Np - N)))
    s = scale.reshape(1, N).astype(jnp.float32)
    c = bias.reshape(1, N).astype(jnp.float32)
    if Np != N:
        s = jnp.pad(s, ((0, 0), (0, Np - N)))
        c = jnp.pad(c, ((0, 0), (0, Np - N)))

    a_spec = pl.BlockSpec((tm, tk), lambda i, j, k: (i, k))
    b_spec = pl.BlockSpec((tk, tn), lambda i, j, k: (k, j))
    v_spec = pl.BlockSpec((1, tn), lambda i, j, k: (0, j))
    o_spec = pl.BlockSpec((tm, tn), lambda i, j, k: (i, j))

    n_res = 1 if residual is not None else 0
    cost = pl.CostEstimate(
        flops=2 * Mp * Np * Kp,
        transcendentals=0,
        bytes_accessed=2 * (Mp * Kp + Kp * Np) + 4 * Mp * Np * (1 + n_res))

    if residual is None:
        kern = functools.partial(_mm_bn_kernel, relu=relu)
        operands = (a, b, s, c)
        in_specs = [a_spec, b_spec, v_spec, v_spec]
    else:
        r = residual.reshape(M, N).astype(jnp.float32)
        if (Mp, Np) != (M, N):
            r = jnp.pad(r, ((0, Mp - M), (0, Np - N)))
        kern = functools.partial(_mm_bn_res_kernel, relu=relu)
        operands = (a, b, s, c, r)
        in_specs = [a_spec, b_spec, v_spec, v_spec, o_spec]

    out = pl.pallas_call(
        kern,
        out_shape=jax.ShapeDtypeStruct((Mp, Np), jnp.float32),
        grid=(Mp // tm, Np // tn, Kp // tk),
        in_specs=in_specs,
        out_specs=o_spec,
        scratch_shapes=[pltpu.VMEM((tm, tn), jnp.float32)],
        compiler_params=pltpu.CompilerParams(
            dimension_semantics=("parallel", "parallel", "arbitrary")),
        cost_estimate=cost,
    )(*operands)

    if (Mp, Np) != (M, N):
        out = out[:M, :N]
    return out


# --------------------------- elementwise wrappers ----------------------------

@jax.jit
def pallas_add(a, b):
    """a + b on identically shaped NHWC tensors (lane-dense, row-tiled)."""
    rows, width = _flat2d(a.shape)
    tr = _row_tile(rows)
    out = pl.pallas_call(
        _add_kernel,
        out_shape=jax.ShapeDtypeStruct((rows, width), jnp.float32),
        grid=(rows // tr,),
        in_specs=[pl.BlockSpec((tr, width), lambda r: (r, 0)),
                  pl.BlockSpec((tr, width), lambda r: (r, 0))],
        out_specs=pl.BlockSpec((tr, width), lambda r: (r, 0)),
        compiler_params=pltpu.CompilerParams(dimension_semantics=("parallel",)),
    )(a.reshape(rows, width).astype(jnp.float32),
      b.reshape(rows, width).astype(jnp.float32))
    return out.reshape(a.shape)


@jax.jit
def maxpool_3x3_s2(x):
    """MaxPool2d(kernel_size=3, stride=2, padding=1) on NHWC."""
    N, H, W, C = x.shape
    xp = jnp.pad(x, ((0, 0), (1, 1), (1, 1), (0, 0)), constant_values=-jnp.inf)
    Ho = (H + 2 - 3) // 2 + 1
    Wo = (W + 2 - 3) // 2 + 1
    rows, width = _flat2d((N, Ho, Wo, C))
    wins = [xp[:, i:i + 2 * Ho:2, j:j + 2 * Wo:2, :].reshape(rows, width)
            for i in range(3) for j in range(3)]
    stk = jnp.stack(wins, axis=0)                 # (9, rows, width)
    tr = _row_tile(rows)
    out = pl.pallas_call(
        _max9_kernel,
        out_shape=jax.ShapeDtypeStruct((rows, width), jnp.float32),
        grid=(rows // tr,),
        in_specs=[pl.BlockSpec((9, tr, width), lambda r: (0, r, 0))],
        out_specs=pl.BlockSpec((tr, width), lambda r: (r, 0)),
        compiler_params=pltpu.CompilerParams(dimension_semantics=("parallel",)),
    )(stk)
    return out.reshape(N, Ho, Wo, C)


# ------------------------------ conv wrappers --------------------------------

def _im2col(x, kh, kw, stride, pad):
    """NHWC -> (N*Ho*Wo, kh*kw*C) patches (kh-major, kw, then C)."""
    N, H, W, C = x.shape
    xp = jnp.pad(x, ((0, 0), (pad, pad), (pad, pad), (0, 0)))
    Ho = (H + 2 * pad - kh) // stride + 1
    Wo = (W + 2 * pad - kw) // stride + 1
    cols = []
    for i in range(kh):
        for j in range(kw):
            cols.append(xp[:, i:i + stride * Ho:stride, j:j + stride * Wo:stride, :])
    patches = jnp.concatenate(cols, axis=-1)
    return patches.reshape(N * Ho * Wo, kh * kw * C), (N, Ho, Wo)


@functools.partial(jax.jit, static_argnames=("stride", "pad", "relu"))
def conv2d_bn(x, w, scale, bias, *, stride=1, pad=0, relu=True, residual=None):
    """Conv2d(bias=False) + BatchNorm(eval) [+ residual] [+ ReLU], all fused.

    x: NHWC f32; w: (kh, kw, Cin, Cout); residual: NHWC f32 matching output.
    """
    kh, kw, cin, cout = w.shape
    xb = x.astype(jnp.bfloat16)
    if kh == 1 and kw == 1 and pad == 0:
        xs = xb[:, ::stride, ::stride, :]
        n, h, wd, _ = xs.shape
        a = xs.reshape(n * h * wd, cin)
        out_shape = (n, h, wd, cout)
    else:
        a, (n, ho, wo) = _im2col(xb, kh, kw, stride, pad)
        out_shape = (n, ho, wo, cout)
    r = None if residual is None else residual.reshape(-1, cout)
    y = fused_matmul(a, w.reshape(kh * kw * cin, cout), scale, bias,
                     relu=relu, residual=r)
    return y.reshape(out_shape)


@functools.partial(jax.jit, static_argnames=("relu",))
def conv_transpose2d(x, w_t, *, relu=False):
    """PyTorch ConvTranspose2d(k=4, s=2, p=1, bias=False) [+ fused ReLU].

    Sub-pixel decomposition: each of the 4 output phases (py, px) is a 2x2
    convolution of x with a strided sub-kernel of the flipped weights.
    """
    cin, cout, kh, kw = w_t.shape
    N, H, W, _ = x.shape
    xb = x.astype(jnp.bfloat16)
    # direct-conv equivalent weights: (4,4,Cin,Cout), spatially flipped
    wf = jnp.transpose(w_t, (2, 3, 0, 1))[::-1, ::-1, :, :]
    ones = jnp.ones((cout,), jnp.float32)
    zeros = jnp.zeros((cout,), jnp.float32)

    phase_rows = []
    for py in range(2):
        row = []
        for px in range(2):
            kern = wf[py::2, px::2].reshape(4 * cin, cout)
            xp = jnp.pad(xb, ((0, 0), (1 - py, py), (1 - px, px), (0, 0)))
            cols = [xp[:, a:a + H, b:b + W, :] for a in range(2) for b in range(2)]
            patches = jnp.concatenate(cols, axis=-1).reshape(N * H * W, 4 * cin)
            yp = fused_matmul(patches, kern, ones, zeros, relu=relu)
            row.append(yp.reshape(N, H, W, cout))
        phase_rows.append(jnp.stack(row, axis=0))          # (2, N, H, W, C)
    y = jnp.stack(phase_rows, axis=0)                       # (py, px, N, H, W, C)
    y = jnp.transpose(y, (2, 3, 0, 4, 1, 5)).reshape(N, 2 * H, 2 * W, cout)
    return y


# ----------------------------- parameter setup ------------------------------

class Init:
    """Deterministic synthetic initializer (He-init convs, identity BN stats)."""

    def __init__(self, key):
        self.key = key

    def _next(self):
        self.key, k = jax.random.split(self.key)
        return k

    def conv(self, kh, kw, cin, cout):
        fan_in = kh * kw * cin
        return jax.random.normal(self._next(), (kh, kw, cin, cout),
                                 jnp.float32) * (2.0 / fan_in) ** 0.5

    def convT(self, cin, cout, kh, kw):
        fan_in = kh * kw * cin
        return jax.random.normal(self._next(), (cin, cout, kh, kw),
                                 jnp.float32) * (2.0 / fan_in) ** 0.5

    def bn(self, c):
        gamma = jnp.ones((c,), jnp.float32)
        beta = jnp.zeros((c,), jnp.float32)
        mean = jnp.zeros((c,), jnp.float32)
        var = jnp.ones((c,), jnp.float32)
        eps = 1e-5
        scale = gamma / jnp.sqrt(var + eps)
        bias = beta - mean * scale
        return scale, bias


def make_bottleneck_params(init, in_c, places, stride=1, downsampling=False,
                           expansion=4):
    p = {
        'stride': stride,
        'w1': init.conv(1, 1, in_c, places), 'bn1': init.bn(places),
        'w2': init.conv(3, 3, places, places), 'bn2': init.bn(places),
        'w3': init.conv(1, 1, places, places * expansion),
        'bn3': init.bn(places * expansion),
    }
    if downsampling:
        p['wd'] = init.conv(1, 1, in_c, places * expansion)
        p['bnd'] = init.bn(places * expansion)
    return p


def bottleneck_forward(x, p):
    out = conv2d_bn(x, p['w1'], *p['bn1'], stride=1, pad=0, relu=True)
    out = conv2d_bn(out, p['w2'], *p['bn2'], stride=p['stride'], pad=1, relu=True)
    if 'wd' in p:
        res = conv2d_bn(x, p['wd'], *p['bnd'], stride=p['stride'], pad=0, relu=False)
    else:
        res = x
    # conv3 + bn3 + residual-add + ReLU fused into one matmul epilogue
    return conv2d_bn(out, p['w3'], *p['bn3'], stride=1, pad=0, relu=True,
                     residual=res)


def make_resnet_layer(init, in_c, places, blocks, stride):
    layers = [make_bottleneck_params(init, in_c, places, stride, downsampling=True)]
    for _ in range(1, blocks):
        layers.append(make_bottleneck_params(init, places * 4, places, 1,
                                             downsampling=False))
    return layers


def make_generatorfeature_params(key):
    init = Init(key)
    params = {
        'conv1': init.conv(7, 7, 3, 64), 'bn1': init.bn(64),
        'layer1': make_resnet_layer(init, 64, 64, 3, stride=1),
        'layer2': make_resnet_layer(init, 256, 128, 4, stride=2),
        'layer3': make_resnet_layer(init, 512, 256, 6, stride=2),
        # layer4[0]: every conv stride forced to (1,1) as in the PyTorch module
        'layer4': make_resnet_layer(init, 1024, 512, 3, stride=1),
        'deconv1': [make_bottleneck_params(init, 2048, 512),
                    make_bottleneck_params(init, 2048, 256, downsampling=True)],
        'deconv2': [make_bottleneck_params(init, 1024, 256),
                    make_bottleneck_params(init, 1024, 128, downsampling=True)],
        'deconv3': [make_bottleneck_params(init, 512, 128),
                    make_bottleneck_params(init, 512, 64, downsampling=True)],
        'deconv4': [make_bottleneck_params(init, 256, 64),
                    make_bottleneck_params(init, 256, 32, downsampling=True)],
        'deconv5': init.convT(64, 3, 4, 4),
        # up1 is defined in the PyTorch __init__ but never used in forward()
        'up2': init.convT(512, 512, 4, 4),
        'up3': init.convT(256, 256, 4, 4),
        'up4': init.convT(128, 64, 4, 4),
    }
    return params


# --------------------------------- forward ----------------------------------

def generatorfeature_forward(params, x_nchw):
    x = jnp.transpose(x_nchw.astype(jnp.float32), (0, 2, 3, 1))   # NCHW -> NHWC

    x1 = conv2d_bn(x, params['conv1'], *params['bn1'], stride=2, pad=3, relu=True)
    x2 = maxpool_3x3_s2(x1)
    for p in params['layer1']:
        x2 = bottleneck_forward(x2, p)
    x3 = x2
    for p in params['layer2']:
        x3 = bottleneck_forward(x3, p)
    x4 = x3
    for p in params['layer3']:
        x4 = bottleneck_forward(x4, p)
    x5 = x4
    for p in params['layer4']:
        x5 = bottleneck_forward(x5, p)

    dx1 = x5
    for p in params['deconv1']:
        dx1 = bottleneck_forward(dx1, p)
    dx2 = pallas_add(dx1, x4)
    for p in params['deconv2']:
        dx2 = bottleneck_forward(dx2, p)
    dx3 = pallas_add(conv_transpose2d(dx2, params['up2'], relu=True), x3)
    for p in params['deconv3']:
        dx3 = bottleneck_forward(dx3, p)
    dx4 = pallas_add(conv_transpose2d(dx3, params['up3'], relu=True), x2)
    for p in params['deconv4']:
        dx4 = bottleneck_forward(dx4, p)
    dx5 = pallas_add(conv_transpose2d(dx4, params['up4'], relu=True), x1)
    dx5 = conv_transpose2d(dx5, params['deconv5'], relu=False)

    return jnp.transpose(dx5, (0, 3, 1, 2))   # NHWC -> NCHW


# ----------------------------------- main ------------------------------------

if __name__ == "__main__":
    key = jax.random.PRNGKey(0)
    key_w, key_x = jax.random.split(key)

    params = make_generatorfeature_params(key_w)

    # input: NCHW, RGB image, spatial size divisible by 32
    x = jax.random.normal(key_x, (1, 3, 64, 64), jnp.float32)

    out = generatorfeature_forward(params, x)
    out = jax.block_until_ready(out)

    assert out.shape == (1, 3, 64, 64), out.shape
    assert bool(jnp.isfinite(out).all())
    print("KERNEL_OK")
</pallas_src>

<mosaic_0001>
module attributes {stable_mosaic.version = 11 : i64} {
  func.func @_mm_bn_kernel(%arg0: i32, %arg1: i32, %arg2: i32, %arg3: memref<128x147xbf16, #tpu.memory_space<vmem>>, %arg4: memref<147x64xbf16, #tpu.memory_space<vmem>>, %arg5: memref<1x64xf32, #tpu.memory_space<vmem>>, %arg6: memref<1x64xf32, #tpu.memory_space<vmem>>, %arg7: memref<128x64xf32, #tpu.memory_space<vmem>>, %arg8: memref<128x64xf32, #tpu.memory_space<vmem>>) attributes {dimension_semantics = [#tpu.dimension_semantics<parallel>, #tpu.dimension_semantics<parallel>, #tpu.dimension_semantics<arbitrary>], iteration_bounds = array<i64: 8, 1, 1>, scalar_prefetch = 0 : i64, scratch_operands = 1 : i64, tpu.core_type = #tpu.core_type<tc>, window_params = [{transform_indices = @transform_0, window_bounds = array<i64: 128, 147>}, {transform_indices = @transform_1, window_bounds = array<i64: 147, 64>}, {transform_indices = @transform_2, window_bounds = array<i64: 1, 64>}, {transform_indices = @transform_3, window_bounds = array<i64: 1, 64>}, {transform_indices = @transform_4, window_bounds = array<i64: 128, 64>}]} {
    %c0_i32 = arith.constant 0 : i32
    %0 = arith.cmpi eq, %arg2, %c0_i32 : i32
    %1 = arith.extui %0 : i1 to i32
    %c0_i32_0 = arith.constant 0 : i32
    %2 = arith.cmpi ne, %1, %c0_i32_0 : i32
    scf.if %2 {
      %cst_10 = arith.constant 0.000000e+00 : f32
      %12 = vector.broadcast %cst_10 : f32 to vector<128x64xf32>
      %c0_11 = arith.constant 0 : index
      %c0_12 = arith.constant 0 : index
      %13 = vector.load %arg8[%c0_11, %c0_12] : memref<128x64xf32, #tpu.memory_space<vmem>>, vector<128x64xf32>
      tpu.vector_store %arg8[%c0_11, %c0_12], %12 {strides = array<i32>} : memref<128x64xf32, #tpu.memory_space<vmem>>, vector<128x64xf32>,
    } else {
    }
    %c0 = arith.constant 0 : index
    %c0_1 = arith.constant 0 : index
    %3 = vector.load %arg8[%c0, %c0_1] : memref<128x64xf32, #tpu.memory_space<vmem>>, vector<128x64xf32>
    %c0_2 = arith.constant 0 : index
    %c0_3 = arith.constant 0 : index
    %4 = vector.load %arg3[%c0_2, %c0_3] : memref<128x147xbf16, #tpu.memory_space<vmem>>, vector<128x147xbf16>
    %c0_4 = arith.constant 0 : index
    %c0_5 = arith.constant 0 : index
    %5 = vector.load %arg4[%c0_4, %c0_5] : memref<147x64xbf16, #tpu.memory_space<vmem>>, vector<147x64xbf16>
    %cst = arith.constant dense<0.000000e+00> : vector<128x64xf32>
    %6 = tpu.matmul %4, %5, %cst {dimension_numbers = #tpu.dot_dimension_numbers<[1], [0], [0], [1], [0, 0, 1, 1], [], []>} : vector<128x147xbf16>, vector<147x64xbf16>, vector<128x64xf32> -> vector<128x64xf32>
    %7 = arith.addf %3, %6 : vector<128x64xf32>
    %c0_6 = arith.constant 0 : index
    %c0_7 = arith.constant 0 : index
    %8 = vector.load %arg8[%c0_6, %c0_7] : memref<128x64xf32, #tpu.memory_space<vmem>>, vector<128x64xf32>
    tpu.vector_store %arg8[%c0_6, %c0_7], %7 {strides = array<i32>} : memref<128x64xf32, #tpu.memory_space<vmem>>, vector<128x64xf32>,
    %c0_i32_8 = arith.constant 0 : i32
    %9 = arith.cmpi eq, %arg2, %c0_i32_8 : i32
    %10 = arith.extui %9 : i1 to i32
    %c0_i32_9 = arith.constant 0 : i32
    %11 = arith.cmpi ne, %10, %c0_i32_9 : i32
    scf.if %11 {
      %c0_10 = arith.constant 0 : index
      %c0_11 = arith.constant 0 : index
      %12 = vector.load %arg8[%c0_10, %c0_11] : memref<128x64xf32, #tpu.memory_space<vmem>>, vector<128x64xf32>
      %c0_12 = arith.constant 0 : index
      %c0_13 = arith.constant 0 : index
      %13 = vector.load %arg5[%c0_12, %c0_13] : memref<1x64xf32, #tpu.memory_space<vmem>>, vector<1x64xf32>
      %14 = vector.broadcast %13 : vector<1x64xf32> to vector<128x64xf32>
      %15 = arith.mulf %12, %14 : vector<128x64xf32>
      %c0_14 = arith.constant 0 : index
      %c0_15 = arith.constant 0 : index
      %16 = vector.load %arg6[%c0_14, %c0_15] : memref<1x64xf32, #tpu.memory_space<vmem>>, vector<1x64xf32>
      %17 = vector.broadcast %16 : vector<1x64xf32> to vector<128x64xf32>
      %18 = arith.addf %15, %17 : vector<128x64xf32>
      %cst_16 = arith.constant 0.000000e+00 : f32
      %19 = vector.broadcast %cst_16 : f32 to vector<128x64xf32>
      %20 = arith.maximumf %18, %19 : vector<128x64xf32>
      %c0_17 = arith.constant 0 : index
      %c0_18 = arith.constant 0 : index
      %21 = vector.load %arg7[%c0_17, %c0_18] : memref<128x64xf32, #tpu.memory_space<vmem>>, vector<128x64xf32>
      tpu.vector_store %arg7[%c0_17, %c0_18], %20 {strides = array<i32>} : memref<128x64xf32, #tpu.memory_space<vmem>>, vector<128x64xf32>,
    } else {
    }
    return
  }
  func.func @transform_0(%arg0: i32, %arg1: i32, %arg2: i32) -> (i32, i32) {
    %c0_i32 = arith.constant 0 : i32
    return %arg0, %arg2 : i32, i32
  }
  func.func @transform_1(%arg0: i32, %arg1: i32, %arg2: i32) -> (i32, i32) {
    %c0_i32 = arith.constant 0 : i32
    return %arg2, %arg1 : i32, i32
  }
  func.func @transform_2(%arg0: i32, %arg1: i32, %arg2: i32) -> (i32, i32) {
    %c0_i32 = arith.constant 0 : i32
    %c0_i32_0 = arith.constant 0 : i32
    return %c0_i32, %arg1 : i32, i32
  }
  func.func @transform_3(%arg0: i32, %arg1: i32, %arg2: i32) -> (i32, i32) {
    %c0_i32 = arith.constant 0 : i32
    %c0_i32_0 = arith.constant 0 : i32
    return %c0_i32, %arg1 : i32, i32
  }
  func.func @transform_4(%arg0: i32, %arg1: i32, %arg2: i32) -> (i32, i32) {
    %c0_i32 = arith.constant 0 : i32
    return %arg0, %arg1 : i32, i32
  }
}

</mosaic_0001>

<bundles_post_ra>
// kernel: conv2d_bn.1
= control target key start
LH: loop header
LB: loop body
LE: loop exit
PB: predicated region body
PF: predicated region fallthrough
CT: control target
= control target key end

     0   :  { %9 = vsyncpa [#allocation4], 0  ;;  %s1482_s0 = inlined_call_operand.vmem [shape: bf16[1024,147], index: 0, kind: input, shape index: {}]   ;;  %s1483_s1 = inlined_call_operand.vmem [shape: bf16[147,64], index: 1, kind: input, shape index: {}]   ;;  %s1484_s2 = inlined_call_operand.vmem [shape: f32[1,64], index: 2, kind: input, shape index: {}]   ;;  %s1485_s3 = inlined_call_operand.vmem [shape: f32[1,64], index: 3, kind: input, shape index: {}]   ;;  %s1486_s4 = inlined_call_operand.hbm [shape: f32[1024,64], index: 4, kind: output, shape index: {}]  }
   0x1   :  { %11 = vsyncpa [#allocation4 + $0x1], 0  ;;  %s1179_s15 = smov 0   ;;  %s1181_s16 = smov 0  }
   0x2   :  { %s1183_s17 = smov 0   ;;  %s1185_s18 = smov 0  }
   0x3   :  { %s1187_s19 = smov 0   ;;  %s1189_s20 = smov 0  }
   0x4 LB: > { %s899_s21 = sadd.s32 4294967295, %s1146_s20   ;;  %s900_s22 = sadd.s32 4294967294, %s1146_s20   ;;  %s1146_s20 = sphi %s1189_s20, %s17_s20   ;;  %s1142_s19 = sphi %s1187_s19, %s1493_s19   ;;  %s1138_s18 = sphi %s1185_s18, %s1492_s18   ;;  %s1134_s17 = sphi %s1183_s17, %s1491_s17   ;;  %s1130_s16 = sphi %s1181_s16, %s1490_s16   ;;  %s1126_s15 = sphi %s1179_s15, %s1489_s15  }
   0x5   : > { %s36_s23 = sadd.s32 1, %s1142_s19  ;;  %s153_s24 = sadd.s32 1, %s1134_s17 }
   0x6   : > { %p38_p0 = scmp.ge.s32.totalorder %s36_s23, 8  ;;  %p163_p1 = scmp.ne.s32.totalorder %s1134_s17, %s1130_s16 }
   0x7   : > { %p164_p2 = scmp.eq.s32.totalorder %s899_s21, 7  ;;  %p169_p3 = scmp.ne.s32.totalorder %s1130_s16, %s1126_s15 }
   0x8   : > { %s1495_s23 = smov (%p38_p0, %s36_s23), 0  ;;  %p170_p5 = scmp.eq.s32.totalorder %s900_s22, 7 }
   0x9   : > { %p1219_p4 = por %p164_p2, %p163_p1  ;;  %s148_s26 = ssub.s32 %s1142_s19, %s1495_s23 }
   0xa   : > { %p906_p6 = scmp.ge.s32.totalorder %s1146_s20, 1  ;;  %p151_p7 = scmp.eq.s32.totalorder %s148_s26, 0 }
   0xb   : > { %p1226_p8 = por %p170_p5, %p169_p3  ;;  %p227_p9 = scmp.lt.s32.totalorder %s1146_s20, 9 }
   0xc   : > { %s1232_s28 = scalar_select %p151_p7, %s1134_s17, %s153_s24  }
   0xd   : > { %p228_p10 = pnand %p906_p6, %p227_p9 }
   0xe   : > { %v1034_v0 = vld [vmem:[%s1483_s1] sm:$0xff] (!%p228_p10)   ;;  %v1148_v1 = vmov (!%p228_p10), 0   ;;  %v1035_v2 = vld [vmem:[%s1483_s1 + $0x8] sm:$0xff] (!%p228_p10)   ;;  %v1036_v3 = vld [vmem:[%s1483_s1 + $0x10] sm:$0xff] (!%p228_p10)   ;;  %s908_s9 = sshll.u32 (!%p228_p10), %s1138_s18, 4  ;;  %vm305_vm0 = vcmask (!%p228_p10), 523264  }
   0xf   : > { %231 = sbr.rel (%p228_p10) target bundleno = 325 (0x145), region = 36  ;;  %534 = vmatprep.subr.bf16.mxu0 (!%p228_p10), %v1148_v1  ;;  %954 = vmatprep.subr.bf16.mxu1 (!%p228_p10), %v1148_v1  ;;  %p274_p11 = scmp.lt.s32.totalorder (!%p228_p10), %s908_s9, 127  ;;  %v1037_v4 = vld [vmem:[%s1483_s1 + $0x18] sm:$0xff] (!%p228_p10)   ;;  %v1149_v5 = vmov (!%p228_p10), 0.0   ;;  %v1038_v6 = vld [vmem:[%s1483_s1 + $0x20] sm:$0xff] (!%p228_p10)   ;;  %vm502_vm1 = vcmask (!%p228_p10), 154624  }
  0x10   : > { %535 = vmatpush1.bf16.msra.mxu0 (!%p228_p10), %v1034_v0  ;;  %964 = vmatpush1.bf16.msra.mxu1 (!%p228_p10), %v1034_v0  ;;  %306 = vst.msk [vmem:[#allocation2] sm:$0xff] (!%p228_p10), %vm305_vm0, %v1149_v5  ;;  %307 = vst.msk [vmem:[#allocation2 + $0x8] sm:$0xff] (!%p228_p10), %vm305_vm0, %v1149_v5  ;;  %v1039_v9 = vld [vmem:[%s1483_s1 + $0x28] sm:$0xff] (!%p228_p10)   ;;  %v1040_v10 = vld [vmem:[%s1483_s1 + $0x30] sm:$0xff] (!%p228_p10)   ;;  %vm527_vm2 = vcmask (!%p228_p10), 1040384   ;;  %vm528_vm3 = vcmask (!%p228_p10), 1041408  }
  0x11   : > { %536 = vmatprep.subr.bf16.mxu0 (!%p228_p10), %v1148_v1  ;;  %955 = vmatprep.subr.bf16.mxu1 (!%p228_p10), %v1148_v1  ;;  %308 = vst.msk [vmem:[#allocation2 + $0x10] sm:$0xff] (!%p228_p10), %vm305_vm0, %v1149_v5  ;;  %309 = vst.msk [vmem:[#allocation2 + $0x18] sm:$0xff] (!%p228_p10), %vm305_vm0, %v1149_v5  ;;  %v1041_v11 = vld [vmem:[%s1483_s1 + $0x38] sm:$0xff] (!%p228_p10)   ;;  %v1150_v12 = vmov (!%p228_p10), 65535   ;;  %v1042_v14 = vld [vmem:[%s1483_s1 + $0x40] sm:$0xff] (!%p228_p10)   ;;  %s953_s29 = sshll.u32 (!%p228_p10), %s1138_s18, 11 }
  0x12   : > { %310 = vst.msk [vmem:[#allocation2 + $0x20] sm:$0xff] (!%p228_p10), %vm305_vm0, %v1149_v5  ;;  %311 = vst.msk [vmem:[#allocation2 + $0x28] sm:$0xff] (!%p228_p10), %vm305_vm0, %v1149_v5  ;;  %v529_v13 = vsel (!%p228_p10), %vm527_vm2, 4294967295, %v1150_v12  ;;  %v1043_v15 = vld [vmem:[%s1483_s1 + $0x48] ss:$0 sps:$4 sm:$0x33] (!%p228_p10)   ;;  %s1422_s7 = scalar_lea.hbm (!%p228_p10), %s1486_s4, %s953_s29 }
  0x13   : > { %312 = vst.msk [vmem:[#allocation2 + $0x30] sm:$0xff] (!%p228_p10), %vm305_vm0, %v1149_v5  ;;  %313 = vst.msk [vmem:[#allocation2 + $0x38] sm:$0xff] (!%p228_p10), %vm305_vm0, %v1149_v5  ;;  %v530_v16 = vsel (!%p228_p10), %vm528_vm3, %v529_v13, 0  ;;  %v1338_v50 = vld [vmem:[%s1484_s2] ss:$0 sm:$0xff] (!%p228_p10) }
  0x14   : > { %537 = vmatpush1.bf16.msra.mxu0 (!%p228_p10), %v1035_v2  ;;  %965 = vmatpush1.bf16.msra.mxu1 (!%p228_p10), %v1035_v2  ;;  %314 = vst.msk [vmem:[#allocation2 + $0x40] sm:$0xff] (!%p228_p10), %vm305_vm0, %v1149_v5  ;;  %315 = vst.msk [vmem:[#allocation2 + $0x48] sm:$0xff] (!%p228_p10), %vm305_vm0, %v1149_v5  ;;  %v532_v17 = vand.u32 (!%p228_p10), %v1043_v15, %v530_v16  ;;  %v1343_v60 = vld [vmem:[%s1485_s3] ss:$0 sm:$0xff] (!%p228_p10) }
  0x15   : > { %538 = vmatprep.subr.bf16.mxu0 (!%p228_p10), %v1148_v1  ;;  %956 = vmatprep.subr.bf16.mxu1 (!%p228_p10), %v1148_v1  ;;  %316 = vst.msk [vmem:[#allocation2 + $0x50] sm:$0xff] (!%p228_p10), %vm305_vm0, %v1149_v5  ;;  %317 = vst.msk [vmem:[#allocation2 + $0x58] sm:$0xff] (!%p228_p10), %vm305_vm0, %v1149_v5 }
  0x16   : > { %s1497_s9 = smov (!%p274_p11, %s908_s9), 127  ;;  %318 = vst.msk [vmem:[#allocation2 + $0x60] sm:$0xff] %vm305_vm0, %v1149_v5  ;;  %319 = vst.msk [vmem:[#allocation2 + $0x68] sm:$0xff] %vm305_vm0, %v1149_v5 }
  0x17   : > { %s952_s12 = sshll.u32 %s1497_s9, 3  ;;  %320 = vst.msk [vmem:[#allocation2 + $0x70] sm:$0xff] %vm305_vm0, %v1149_v5  ;;  %321 = vst.msk [vmem:[#allocation2 + $0x78] sm:$0xff] %vm305_vm0, %v1149_v5  ;;  %v322_v32 = vld [vmem:[#allocation2] sm:$0xff]  ;;  %v323_v36 = vld [vmem:[#allocation2 + $0x8] sm:$0xff]  ;;  %s1151_s9 = smov [#allocation3]  }
  0x18   : > { %539 = vmatpush1.bf16.msra.mxu0 %v1036_v3  ;;  %966 = vmatpush1.bf16.msra.mxu1 %v1036_v3  ;;  %s1274_s21 = scalar_lea.vmem %s1482_s0, %s952_s12  ;;  %v324_v48 = vld [vmem:[#allocation2 + $0x10] sm:$0xff]  ;;  %s269_s12 = sand.u32 1, %s1130_s16   ;;  %v325_v53 = vld [vmem:[#allocation2 + $0x18] sm:$0xff] }
  0x19   : > { %540 = vmatprep.subr.bf16.mxu0 %v1148_v1  ;;  %957 = vmatprep.subr.bf16.mxu1 %v1148_v1  ;;  %v1046_v7 = vld [vmem:[%s1274_s21 + $0x4] ss:$8 sps:$4 sm:$0xff]   ;;  %v1044_v18 = vld [vmem:[%s1274_s21] ss:$8 sps:$4 sm:$0xff]   ;;  %v1050_v20 = vld [vmem:[%s1274_s21 + $0x14] ss:$8 sps:$4 sm:$0xff]  }
  0x1a   : > { %v1049_v8 = vld [vmem:[%s1274_s21 + $0x44] ss:$8 sps:$4 sm:$0xff]   ;;  %937 = vmatprep.mubr.msk.bf16.mxu0 %vm502_vm1, %v1046_v7  ;;  %v1047_v19 = vld [vmem:[%s1274_s21 + $0x40] ss:$8 sps:$4 sm:$0xff]   ;;  %v1052_v21 = vld [vmem:[%s1274_s21 + $0x54] ss:$8 sps:$4 sm:$0xff]  }
  0x1b   : > { %941 = vmatprep.mubr.msk.bf16.mxu1 %vm502_vm1, %v1049_v8  ;;  %v1054_v22 = vld [vmem:[%s1274_s21 + $0x10] ss:$8 sps:$4 sm:$0xff]   ;;  %v1056_v24 = vld [vmem:[%s1274_s21 + $0x24] ss:$8 sps:$4 sm:$0xff]   ;;  %v1060_v26 = vld [vmem:[%s1274_s21 + $0x20] ss:$8 sps:$4 sm:$0xff]  }
  0x1c   : > { %541 = vmatpush1.bf16.msra.mxu0 %v1037_v4  ;;  %967 = vmatpush1.bf16.msra.mxu1 %v1037_v4  ;;  %v1055_v23 = vld [vmem:[%s1274_s21 + $0x50] ss:$8 sps:$4 sm:$0xff]   ;;  %v1058_v25 = vld [vmem:[%s1274_s21 + $0x64] ss:$8 sps:$4 sm:$0xff]   ;;  %v1061_v27 = vld [vmem:[%s1274_s21 + $0x60] ss:$8 sps:$4 sm:$0xff]  }
  0x1d   : > { %542 = vmatprep.subr.bf16.mxu0 %v1148_v1  ;;  %958 = vmatprep.subr.bf16.mxu1 %v1148_v1  ;;  %v1062_v28 = vld [vmem:[%s1274_s21 + $0x34] ss:$8 sps:$4 sm:$0xff]   ;;  %v1066_v30 = vld [vmem:[%s1274_s21 + $0x30] ss:$8 sps:$4 sm:$0xff]   ;;  %v330_v33 = vld [vmem:[#allocation2 + $0x40] sm:$0xff]  ;;  %s907_s24 = sshll.u32 %s269_s12, 7 }
  0x1e   : > { %v1064_v29 = vld [vmem:[%s1274_s21 + $0x74] ss:$8 sps:$4 sm:$0xff]   ;;  %v1067_v31 = vld [vmem:[%s1274_s21 + $0x70] ss:$8 sps:$4 sm:$0xff]   ;;  %v331_v37 = vld [vmem:[#allocation2 + $0x48] sm:$0xff]  ;;  %s1359_s26 = scalar_lea.vmem [#allocation3], %s907_s24 }
  0x1f   : > { %v332_v49 = vld [vmem:[#allocation2 + $0x50] sm:$0xff]  ;;  %v333_v54 = vld [vmem:[#allocation2 + $0x58] sm:$0xff]  ;;  %v326_v12 = vld [vmem:[#allocation2 + $0x20] sm:$0xff]  ;;  %s776_s30 = sshll.u32 %s1359_s26, 4  ;;  %s1436_s18 = scalar_lea.sflag [#allocation4], %s269_s12  ;;  %s1424_s30 = int_to_ptr.vmem [resolvable:$true] %s776_s30 }
  0x20   : > { %543 = vmatpush1.bf16.msra.mxu0 %v1038_v6  ;;  %968 = vmatpush1.bf16.msra.mxu1 %v1038_v6  ;;  %v334_v13 = vld [vmem:[#allocation2 + $0x60] sm:$0xff]  ;;  %s1068_s8 = scalar_lea.vmem %s1424_s30, 2048  ;;  %s1072_s10 = sshll.u32 %s1151_s9, 4  ;;  %s1073_s10 = int_to_ptr.vmem [resolvable:$false] %s1072_s10 }
  0x21   : > { %544 = vmatprep.subr.bf16.mxu0 %v1148_v1  ;;  %959 = vmatprep.subr.bf16.mxu1 %v1148_v1  ;;  %p1069_p12 = scmp.ne.s32.totalorder %s1424_s30, %s1068_s8  ;;  %s1074_s11 = scalar_lea.vmem %s1073_s10, 4096 }
  0x22   : > { %p1075_p1 = scmp.lt.s32.totalorder %s1424_s30, %s1073_s10  ;;  %p1076_p2 = scmp.lt.s32.totalorder %s1074_s11, %s1068_s8 }
  0x23   : > { %p1070_p13 = pnand %p1069_p12, %p1219_p4 }
  0x24   : > { %545 = vmatpush1.bf16.msra.mxu0 %v1039_v9  ;;  %969 = vmatpush1.bf16.msra.mxu1 %v1039_v9  ;;  %p1077_p3 = por %p1076_p2, %p1075_p1 }
  0x25   : > { %546 = vmatprep.subr.bf16.mxu0 %v1148_v1  ;;  %960 = vmatprep.subr.bf16.mxu1 %v1148_v1  ;;  %p1071_p0 = pneg %p1070_p13 }
  0x27   : > { %p1078_p5 = pnand %p1077_p3, %p1071_p0 }
  0x28   : > { %547 = vmatpush1.bf16.msra.mxu0 %v1040_v10  ;;  %970 = vmatpush1.bf16.msra.mxu1 %v1040_v10 }
  0x29   : > { %548 = vmatprep.subr.bf16.mxu0 %v1148_v1  ;;  %961 = vmatprep.subr.bf16.mxu1 %v1148_v1 }
  0x2c   : > { %549 = vmatpush1.bf16.msra.mxu0 %v1041_v11  ;;  %971 = vmatpush1.bf16.msra.mxu1 %v1041_v11 }
  0x2d   : > { %550 = vmatprep.subr.bf16.mxu0 %v1148_v1  ;;  %962 = vmatprep.subr.bf16.mxu1 %v1148_v1 }
  0x30   : > { %551 = vmatpush1.bf16.msra.mxu0 %v1042_v14  ;;  %972 = vmatpush1.bf16.msra.mxu1 %v1042_v14 }
  0x31   : > { %552 = vmatprep.subr.bf16.mxu0 %v1148_v1  ;;  %963 = vmatprep.subr.bf16.mxu1 %v1148_v1 }
  0x34   : > { %553 = vmatpush1.bf16.msra.mxu0 %v532_v17  ;;  %973 = vmatpush1.bf16.msra.mxu1 %v532_v17 }
  0x37   : > { %567 = vmatmul.mubr.bf16.vlgmr.msra.gmra.mrb[0].mxu0 %v1044_v18  ;;  %599 = vmatmul.mubr.bf16.vlgmr.msra.gmra.mrb[0].mxu1 %v1047_v19 }
  0x38   : > { %938 = vmatprep.mubr.msk.bf16.mxu0 %vm502_vm1, %v1050_v20  ;;  %942 = vmatprep.mubr.msk.bf16.mxu1 %vm502_vm1, %v1052_v21  ;;  %v327_v20 = vld [vmem:[#allocation2 + $0x28] sm:$0xff] }
  0x39   : > { %v335_v21 = vld [vmem:[#allocation2 + $0x68] sm:$0xff] }
  0x3f   : > { %575 = vmatmul.mubr.bf16.gmra.mrb[4].mxu0 %v1054_v22  ;;  %607 = vmatmul.mubr.bf16.gmra.mrb[4].mxu1 %v1055_v23 }
  0x40   : > { %939 = vmatprep.mubr.msk.bf16.mxu0 %vm502_vm1, %v1056_v24  ;;  %943 = vmatprep.mubr.msk.bf16.mxu1 %vm502_vm1, %v1058_v25 }
  0x47   : > { %583 = vmatmul.mubr.bf16.gmra.mrb[8].mxu0 %v1060_v26  ;;  %615 = vmatmul.mubr.bf16.gmra.mrb[8].mxu1 %v1061_v27 }
  0x48   : > { %940 = vmatprep.mubr.msk.bf16.mxu0 %vm502_vm1, %v1062_v28  ;;  %944 = vmatprep.mubr.msk.bf16.mxu1 %vm502_vm1, %v1064_v29 }
  0x4f   : > { %591 = vmatmul.mubr.bf16.gmra.mrb[12].mxu0 %v1066_v30  ;;  %623 = vmatmul.mubr.bf16.gmra.mrb[12].mxu1 %v1067_v31 }
 0x10a   : > { %v568_v34 = vpop.f32.mrb[0].mxu0  ;;  %v600_v35 = vpop.f32.mrb[0].mxu1 }
 0x10b   : > { %v631_v38 = vadd.f32 %v568_v34, %v322_v32  ;;  %v639_v39 = vadd.f32 %v600_v35, %v330_v33  ;;  %v570_v40 = vpop.f32.mrb[1].mxu0  ;;  %v602_v41 = vpop.f32.mrb[1].mxu1 }
 0x10c   : > { %v571_v42 = vpop.f32.mrb[2].mxu0  ;;  %v603_v43 = vpop.f32.mrb[2].mxu1 }
 0x10d   : > { %648 = vst.msk [vmem:[#allocation2] sm:$0xff] %vm305_vm0, %v631_v38  ;;  %656 = vst.msk [vmem:[#allocation2 + $0x40] sm:$0xff] %vm305_vm0, %v639_v39  ;;  %v632_v44 = vadd.f32 %v571_v42, %v323_v36  ;;  %v640_v45 = vadd.f32 %v603_v43, %v331_v37  ;;  %v573_v46 = vpop.f32.mrb[3].mxu0  ;;  %v605_v47 = vpop.f32.mrb[3].mxu1 }
 0x10f   : > { %649 = vst.msk [vmem:[#allocation2 + $0x8] sm:$0xff] %vm305_vm0, %v632_v44  ;;  %657 = vst.msk [vmem:[#allocation2 + $0x48] sm:$0xff] %vm305_vm0, %v640_v45  ;;  %v328_v44 = vld [vmem:[#allocation2 + $0x30] sm:$0xff] }
 0x110   : > { %v336_v45 = vld [vmem:[#allocation2 + $0x70] sm:$0xff] }
 0x112   : > { %v576_v51 = vpop.f32.mrb[4].mxu0  ;;  %v608_v52 = vpop.f32.mrb[4].mxu1 }
 0x113   : > { %v633_v55 = vadd.f32 %v576_v51, %v324_v48  ;;  %v641_v56 = vadd.f32 %v608_v52, %v332_v49  ;;  %v578_v57 = vpop.f32.mrb[5].mxu0  ;;  %v610_v58 = vpop.f32.mrb[5].mxu1 }
 0x114   : > { %v667_v59 = vld [vmem:[#allocation2] sm:$0xff]  ;;  %v579_v62 = vpop.f32.mrb[6].mxu0  ;;  %v611_v63 = vpop.f32.mrb[6].mxu1 }
 0x115   : > { %v675_v61 = vld [vmem:[#allocation2 + $0x40] sm:$0xff]  ;;  %v690_v0 = vmul.f32 %v1338_v50, %v667_v59  ;;  %650 = vst.msk [vmem:[#allocation2 + $0x10] sm:$0xff] %vm305_vm0, %v633_v55  ;;  %658 = vst.msk [vmem:[#allocation2 + $0x50] sm:$0xff] %vm305_vm0, %v641_v56  ;;  %v634_v2 = vadd.f32 %v579_v62, %v325_v53  ;;  %v642_v3 = vadd.f32 %v611_v63, %v333_v54  ;;  %v581_v4 = vpop.f32.mrb[7].mxu0  ;;  %v613_v5 = vpop.f32.mrb[7].mxu1  ;;  %v329_v53 = vld [vmem:[#allocation2 + $0x38] sm:$0xff] }
 0x116   : > { %v698_v1 = vmul.f32 %v1338_v50, %v675_v61  ;;  %v668_v6 = vld [vmem:[#allocation2 + $0x8] sm:$0xff]  ;;  %v337_v54 = vld [vmem:[#allocation2 + $0x78] sm:$0xff] }
 0x117   : > { %v676_v7 = vld [vmem:[#allocation2 + $0x48] sm:$0xff]  ;;  %v713_v8 = vadd.f32 %v1343_v60, %v690_v0  ;;  %v691_v10 = vmul.f32 %v1338_v50, %v668_v6  ;;  %651 = vst.msk [vmem:[#allocation2 + $0x18] sm:$0xff] %vm305_vm0, %v634_v2  ;;  %659 = vst.msk [vmem:[#allocation2 + $0x58] sm:$0xff] %vm305_vm0, %v642_v3 }
 0x118   : > { %v721_v9 = vadd.f32 %v1343_v60, %v698_v1  ;;  %v699_v11 = vmul.f32 %v1338_v50, %v676_v7 }
 0x119   : > { %v729_v14 = vmax.f32 %v713_v8, 0.0  ;;  %v714_v16 = vadd.f32 %v1343_v60, %v691_v10 }
 0x11a   : > { %v737_v15 = vmax.f32 %v721_v9, 0.0  ;;  %v722_v17 = vadd.f32 %v1343_v60, %v699_v11  ;;  %v584_v18 = vpop.f32.mrb[8].mxu0  ;;  %v616_v19 = vpop.f32.mrb[8].mxu1 }
 0x11b   : > { %745 = vst.msk [vmem:[%s1359_s26] sm:$0xff] %vm305_vm0, %v729_v14  ;;  %v730_v22 = vmax.f32 %v714_v16, 0.0  ;;  %v635_v24 = vadd.f32 %v584_v18, %v326_v12  ;;  %v643_v25 = vadd.f32 %v616_v19, %v334_v13  ;;  %v586_v26 = vpop.f32.mrb[9].mxu0  ;;  %v618_v27 = vpop.f32.mrb[9].mxu1 }
 0x11c   : > { %753 = vst.msk [vmem:[%s1359_s26 + $0x40] sm:$0xff] %vm305_vm0, %v737_v15  ;;  %v738_v23 = vmax.f32 %v722_v17, 0.0  ;;  %v669_v28 = vld [vmem:[#allocation2 + $0x10] sm:$0xff]  ;;  %v587_v30 = vpop.f32.mrb[10].mxu0  ;;  %v619_v31 = vpop.f32.mrb[10].mxu1 }
 0x11d   : > { %v677_v29 = vld [vmem:[#allocation2 + $0x50] sm:$0xff]  ;;  %746 = vst.msk [vmem:[%s1359_s26 + $0x8] sm:$0xff] %vm305_vm0, %v730_v22  ;;  %v692_v32 = vmul.f32 %v1338_v50, %v669_v28  ;;  %652 = vst.msk [vmem:[#allocation2 + $0x20] sm:$0xff] %vm305_vm0, %v635_v24  ;;  %v636_v34 = vadd.f32 %v587_v30, %v327_v20  ;;  %v644_v35 = vadd.f32 %v619_v31, %v335_v21  ;;  %v589_v36 = vpop.f32.mrb[11].mxu0  ;;  %v621_v37 = vpop.f32.mrb[11].mxu1 }
 0x11e   : > { %754 = vst.msk [vmem:[%s1359_s26 + $0x48] sm:$0xff] %vm305_vm0, %v738_v23  ;;  %v700_v33 = vmul.f32 %v1338_v50, %v677_v29  ;;  %660 = vst.msk [vmem:[#allocation2 + $0x60] sm:$0xff] %vm305_vm0, %v643_v25  ;;  %v670_v38 = vld [vmem:[#allocation2 + $0x18] sm:$0xff] }
 0x11f   : > { %v678_v39 = vld [vmem:[#allocation2 + $0x58] sm:$0xff]  ;;  %v715_v40 = vadd.f32 %v1343_v60, %v692_v32  ;;  %v693_v42 = vmul.f32 %v1338_v50, %v670_v38  ;;  %653 = vst.msk [vmem:[#allocation2 + $0x28] sm:$0xff] %vm305_vm0, %v636_v34  ;;  %661 = vst.msk [vmem:[#allocation2 + $0x68] sm:$0xff] %vm305_vm0, %v644_v35 }
 0x120   : > { %v723_v41 = vadd.f32 %v1343_v60, %v700_v33  ;;  %v701_v43 = vmul.f32 %v1338_v50, %v678_v39 }
 0x121   : > { %v731_v46 = vmax.f32 %v715_v40, 0.0  ;;  %v716_v48 = vadd.f32 %v1343_v60, %v693_v42 }
 0x122   : > { %v739_v47 = vmax.f32 %v723_v41, 0.0  ;;  %v724_v49 = vadd.f32 %v1343_v60, %v701_v43  ;;  %v592_v51 = vpop.f32.mrb[12].mxu0  ;;  %v624_v52 = vpop.f32.mrb[12].mxu1 }
 0x123   : > { %747 = vst.msk [vmem:[%s1359_s26 + $0x10] sm:$0xff] %vm305_vm0, %v731_v46  ;;  %v732_v55 = vmax.f32 %v716_v48, 0.0  ;;  %v637_v57 = vadd.f32 %v592_v51, %v328_v44  ;;  %v645_v58 = vadd.f32 %v624_v52, %v336_v45  ;;  %v594_v59 = vpop.f32.mrb[13].mxu0  ;;  %v626_v61 = vpop.f32.mrb[13].mxu1 }
 0x124   : > { %755 = vst.msk [vmem:[%s1359_s26 + $0x50] sm:$0xff] %vm305_vm0, %v739_v47  ;;  %v740_v56 = vmax.f32 %v724_v49, 0.0  ;;  %v671_v62 = vld [vmem:[#allocation2 + $0x20] sm:$0xff]  ;;  %v595_v0 = vpop.f32.mrb[14].mxu0  ;;  %v627_v1 = vpop.f32.mrb[14].mxu1 }
 0x125   : > { %v679_v63 = vld [vmem:[#allocation2 + $0x60] sm:$0xff]  ;;  %748 = vst.msk [vmem:[%s1359_s26 + $0x18] sm:$0xff] %vm305_vm0, %v732_v55  ;;  %v694_v2 = vmul.f32 %v1338_v50, %v671_v62  ;;  %654 = vst.msk [vmem:[#allocation2 + $0x30] sm:$0xff] %vm305_vm0, %v637_v57  ;;  %v638_v4 = vadd.f32 %v595_v0, %v329_v53  ;;  %v646_v5 = vadd.f32 %v627_v1, %v337_v54  ;;  %v597_v6 = vpop.f32.mrb[15].mxu0  ;;  %v629_v7 = vpop.f32.mrb[15].mxu1 }
 0x126   : > { %756 = vst.msk [vmem:[%s1359_s26 + $0x58] sm:$0xff] %vm305_vm0, %v740_v56  ;;  %v702_v3 = vmul.f32 %v1338_v50, %v679_v63  ;;  %662 = vst.msk [vmem:[#allocation2 + $0x70] sm:$0xff] %vm305_vm0, %v645_v58  ;;  %v672_v8 = vld [vmem:[#allocation2 + $0x28] sm:$0xff] }
 0x127   : > { %v680_v9 = vld [vmem:[#allocation2 + $0x68] sm:$0xff]  ;;  %v717_v10 = vadd.f32 %v1343_v60, %v694_v2  ;;  %v695_v12 = vmul.f32 %v1338_v50, %v672_v8  ;;  %655 = vst.msk [vmem:[#allocation2 + $0x38] sm:$0xff] %vm305_vm0, %v638_v4  ;;  %663 = vst.msk [vmem:[#allocation2 + $0x78] sm:$0xff] %vm305_vm0, %v646_v5 }
 0x128   : > { %v725_v11 = vadd.f32 %v1343_v60, %v702_v3  ;;  %v703_v13 = vmul.f32 %v1338_v50, %v680_v9 }
 0x129   : > { %v733_v14 = vmax.f32 %v717_v10, 0.0  ;;  %v718_v16 = vadd.f32 %v1343_v60, %v695_v12 }
 0x12a   : > { %v741_v15 = vmax.f32 %v725_v11, 0.0  ;;  %v726_v17 = vadd.f32 %v1343_v60, %v703_v13 }
 0x12b   : > { %749 = vst.msk [vmem:[%s1359_s26 + $0x20] sm:$0xff] %vm305_vm0, %v733_v14  ;;  %v734_v18 = vmax.f32 %v718_v16, 0.0 }
 0x12c   : > { %757 = vst.msk [vmem:[%s1359_s26 + $0x60] sm:$0xff] %vm305_vm0, %v741_v15  ;;  %v742_v19 = vmax.f32 %v726_v17, 0.0  ;;  %v673_v20 = vld [vmem:[#allocation2 + $0x30] sm:$0xff] }
 0x12d   : > { %v681_v21 = vld [vmem:[#allocation2 + $0x70] sm:$0xff]  ;;  %750 = vst.msk [vmem:[%s1359_s26 + $0x28] sm:$0xff] %vm305_vm0, %v734_v18  ;;  %v696_v22 = vmul.f32 %v1338_v50, %v673_v20 }
 0x12e   : > { %758 = vst.msk [vmem:[%s1359_s26 + $0x68] sm:$0xff] %vm305_vm0, %v742_v19  ;;  %v704_v23 = vmul.f32 %v1338_v50, %v681_v21  ;;  %v674_v24 = vld [vmem:[#allocation2 + $0x38] sm:$0xff] }
 0x12f   : > { %v682_v25 = vld [vmem:[#allocation2 + $0x78] sm:$0xff]  ;;  %v719_v26 = vadd.f32 %v1343_v60, %v696_v22  ;;  %v697_v28 = vmul.f32 %v1338_v50, %v674_v24 }
 0x130   : > { %v727_v27 = vadd.f32 %v1343_v60, %v704_v23  ;;  %v705_v29 = vmul.f32 %v1338_v50, %v682_v25 }
 0x131   : > { %v735_v30 = vmax.f32 %v719_v26, 0.0  ;;  %v720_v32 = vadd.f32 %v1343_v60, %v697_v28 }
 0x132   : > { %v743_v31 = vmax.f32 %v727_v27, 0.0  ;;  %v728_v33 = vadd.f32 %v1343_v60, %v705_v29 }
 0x133   : > { %751 = vst.msk [vmem:[%s1359_s26 + $0x30] sm:$0xff] %vm305_vm0, %v735_v30  ;;  %v736_v50 = vmax.f32 %v720_v32, 0.0 }
 0x134   : > { %759 = vst.msk [vmem:[%s1359_s26 + $0x70] sm:$0xff] %vm305_vm0, %v743_v31  ;;  %v744_v34 = vmax.f32 %v728_v33, 0.0 }
 0x135   : > { %752 = vst.msk [vmem:[%s1359_s26 + $0x38] sm:$0xff] %vm305_vm0, %v736_v50 }
 0x136   : > { %760 = vst.msk [vmem:[%s1359_s26 + $0x78] sm:$0xff] %vm305_vm0, %v744_v34 }
 0x137   : > { %1081 = shalt.err (!%p1078_p5)
}
 0x138   : > { %s1082_s12 = scalar_lea.hbm %s1422_s7, 2048  ;;  %s1086_s21 = scalar_lea.hbm %s1486_s4, 16384 }
 0x139   : > { %p1083_p6 = scmp.ne.s32.totalorder %s1422_s7, %s1082_s12  ;;  %p1087_p10 = scmp.lt.u32.totalorder %s1422_s7, %s1486_s4 }
 0x13a   : > { %p1088_p11 = scmp.lt.u32.totalorder %s1086_s21, %s1082_s12  ;;  %p1090_p13 = scmp.lt.u32.totalorder %s1082_s12, %s1422_s7 }
 0x13b   : > { %p1084_p7 = pnand %p1083_p6, %p1219_p4 }
 0x13c   : > { %p1089_p12 = por %p1088_p11, %p1087_p10 }
 0x13d   : > { %p1085_p9 = pneg %p1084_p7 }
 0x13e   : > { %p1091_p0 = por %p1090_p13, %p1089_p12 }
 0x140   : > { %p1092_p1 = pnand %p1091_p0, %p1085_p9 }
 0x142   : > { %1095 = shalt.err (!%p1092_p1)
}
 0x143   : > { %s1152_s26 = smov 128   ;;  %s1153_s29 = smov 8  }
 0x144   : > { %974 = dma.vmem_to_hbm [thread:$0]  (%p1219_p4), %s1424_s30, 2048, %s1422_s7, %s1436_s18, %s1152_s26, %s1152_s26, %s1153_s29  }
 0x145 PF: > { %p980_p2 = scmp.ge.s32.totalorder %s1146_s20, 2  ;;  %s791_s5 = sand.u32 1, %s1126_s15  }
 0x146   : > { %s792_s6 = scalar_lea.sflag [#allocation4], %s791_s5 }
 0x147   : > { %p977_p3 = pnand %p980_p2, %p1226_p8 }
 0x149   : > { %1121 = dma.done.wait (!%p977_p3), %s792_s6, 2048  }
 0x14a   : > { %1123 = vsyncadd (!%p977_p3), %s792_s6, 4294965248  ;;  %s17_s20 = sadd.s32 1, %s1146_s20   ;;  %s1489_s15 = smov %s1130_s16 }
 0x14b   : > { %p14_p5 = scmp.ge.s32.totalorder %s17_s20, 10   ;;  %s1490_s16 = smov %s1134_s17 }
 0x14c   : > { %s1491_s17 = smov %s1232_s28  ;;  %s1492_s18 = smov %s1142_s19 }
 0x14d   : > { %s1493_s19 = smov %s1495_s23  ;;  %16 = sbr.rel (!%p14_p5) target bundleno = 4 (0x4), region = 88 }
 0x154   :  { %797 = vsyncpa [#allocation4], 1 }
 0x155   :  { %799 = vsyncpa [#allocation4 + $0x1], 1 }

</bundles_post_ra>
